<compile_context>
chip_gen: v7x
topology: tpu7x:2x2x1
jax: 0.10.0
libtpu: 0.0.40
codegen_flags: <defaults>
</compile_context>

<pallas_src>
import jax
import jax.numpy as jnp
from jax.experimental import pallas as pl
from jax.experimental.pallas import tpu as pltpu

_LANE = 128
_DENSE_MAX_DIM = 512          # above this, keep the rank-r factors in-kernel
_TM_CAP = 512                 # vreg-pressure cap on batch-tile rows
_VMEM_TARGET = 32 << 20       # conservative budget, valid on v5e/v6e/v7x


def _round_up(n, m):
    return ((n + m - 1) // m) * m


# ----------------------------------------------------------------------------
# Kernels
# ----------------------------------------------------------------------------
def _mlp_dense_kernel(x_ref, w1_ref, c1_ref, w2_ref, c2_ref, w3_ref, c3_ref,
                      o_ref):
    """relu(x@W1+c1) -> relu(.@W2+c2) -> .@W3+c3 with pre-composed W_l."""
    x = x_ref[...]
    h = jnp.dot(x, w1_ref[...], preferred_element_type=jnp.float32) + c1_ref[...]
    h = jnp.maximum(h, 0.0).astype(w2_ref.dtype)
    h = jnp.dot(h, w2_ref[...], preferred_element_type=jnp.float32) + c2_ref[...]
    h = jnp.maximum(h, 0.0).astype(w3_ref.dtype)
    h = jnp.dot(h, w3_ref[...], preferred_element_type=jnp.float32) + c3_ref[...]
    o_ref[...] = h.astype(o_ref.dtype)


def _mlp_lowrank_kernel(x_ref, a1_ref, b1_ref, c1_ref, a2_ref, b2_ref, c2_ref,
                        a3_ref, b3_ref, c3_ref, o_ref):
    """Same MLP keeping the rank-r factors: (x@A)@B + c per layer."""
    cd = a1_ref.dtype
    x = x_ref[...]

    t = jnp.dot(x, a1_ref[...], preferred_element_type=jnp.float32).astype(cd)
    h = jnp.dot(t, b1_ref[...], preferred_element_type=jnp.float32) + c1_ref[...]
    h = jnp.maximum(h, 0.0).astype(cd)

    t = jnp.dot(h, a2_ref[...], preferred_element_type=jnp.float32).astype(cd)
    h = jnp.dot(t, b2_ref[...], preferred_element_type=jnp.float32) + c2_ref[...]
    h = jnp.maximum(h, 0.0).astype(cd)

    t = jnp.dot(h, a3_ref[...], preferred_element_type=jnp.float32).astype(cd)
    h = jnp.dot(t, b3_ref[...], preferred_element_type=jnp.float32) + c3_ref[...]
    o_ref[...] = h.astype(o_ref.dtype)


# ----------------------------------------------------------------------------
# One-time weight preparation (hoisted out of the per-call path)
# ----------------------------------------------------------------------------
def prepare_params(params, *, compute_dtype=jnp.float32,
                   dense_max_dim=_DENSE_MAX_DIM):
    """Compose / pad / cast the weights once.  Call outside the hot loop."""
    a1, b1, c1 = params["a1"], params["b1"], params["c1"]
    a2, b2, c2 = params["a2"], params["b2"], params["c2"]
    a3, b3, c3 = params["a3"], params["b3"], params["c3"]

    input_dim, rank = a1.shape
    hidden_dim = b1.shape[1]
    output_dim = b3.shape[1]
    out_p = _round_up(output_dim, _LANE)      # lane-dense output (full `vst`)
    pad = out_p - output_dim

    cd = compute_dtype
    dense = max(input_dim, hidden_dim, output_dim) <= dense_max_dim

    # Biases stay f32 (bias-add / ReLU done in f32 in-kernel).
    c1 = c1.astype(jnp.float32)
    c2 = c2.astype(jnp.float32)
    c3 = jnp.pad(c3.astype(jnp.float32), ((0, 0), (0, pad)))

    if dense:
        w1 = (a1 @ b1).astype(cd)
        w2 = (a2 @ b2).astype(cd)
        w3 = jnp.pad(a3 @ b3, ((0, 0), (0, pad))).astype(cd)
        tensors = (w1, c1, w2, c2, w3, c3)
    else:
        b3p = jnp.pad(b3, ((0, 0), (0, pad))).astype(cd)
        tensors = (a1.astype(cd), b1.astype(cd), c1,
                   a2.astype(cd), b2.astype(cd), c2,
                   a3.astype(cd), b3p, c3)

    return dict(mode="dense" if dense else "lowrank",
                tensors=tensors, rank=rank,
                input_dim=input_dim, hidden_dim=hidden_dim,
                output_dim=output_dim, out_p=out_p, compute_dtype=cd)


# ----------------------------------------------------------------------------
# Batch-tile policy
# ----------------------------------------------------------------------------
def _pick_tm(batch, max_rows):
    """Single grid step if the whole batch fits the VMEM budget; otherwise the
    largest divisor of batch (multiple of 8, <= max_rows), preferring an even
    step count so both v7x TensorCores get balanced work."""
    max_rows = max(8, int(max_rows))
    if batch <= max_rows:
        return batch
    cands = [t for t in range(8, max_rows + 1, 8) if batch % t == 0]
    if not cands:
        return batch                      # whole-array block is always legal
    even = [t for t in cands if (batch // t) % 2 == 0]
    return max(even) if even else max(cands)


# ----------------------------------------------------------------------------
# Forward
# ----------------------------------------------------------------------------
def ndlinear_mlp_forward(x, prepared, *, tm=None, keep_padded=False):
    """x: (batch, input_dim).  prepared: output of prepare_params()."""
    batch, input_dim = x.shape
    assert input_dim == prepared["input_dim"]
    hidden = prepared["hidden_dim"]
    out_p = prepared["out_p"]
    rank = prepared["rank"]
    cd = prepared["compute_dtype"]
    cbytes = jnp.dtype(cd).itemsize
    dense = prepared["mode"] == "dense"
    tensors = prepared["tensors"]

    x_c = x.astype(cd)

    # ---- VMEM budget -> batch tile + vmem_limit_bytes ----------------------
    if dense:
        resident = cbytes * (input_dim * hidden + hidden * hidden
                             + hidden * out_p)
    else:
        resident = cbytes * rank * (input_dim + 4 * hidden + out_p)
    resident += 4 * (2 * hidden + out_p)                       # f32 biases

    per_row = 2 * cbytes * input_dim + 2 * 4 * out_p           # dbl-buffered x/out
    per_row += 2 * 4 * max(hidden, out_p)                      # f32 intermediates
    max_rows = max(8, (_VMEM_TARGET - resident) // per_row)

    if tm is None:
        tm = _pick_tm(batch, min(_TM_CAP, max_rows))
    assert batch % tm == 0, "batch must be divisible by the batch tile"
    n_steps = batch // tm

    needed = resident + tm * per_row
    vmem_limit = int(min(max(2 * needed + (2 << 20), 16 << 20), 64 << 20))

    # ---- BlockSpecs ---------------------------------------------------------
    def wspec(shape):
        # whole-array block, same block every grid step -> stays resident
        return pl.BlockSpec(shape, lambda i: (0, 0))

    x_spec = pl.BlockSpec((tm, input_dim), lambda i: (i, 0))
    # TODO(synk): if input_dim grows large while hidden stays small (x-DMA
    # bound), add pipeline_mode=pl.Buffered(3) to x_spec; unnecessary today.

    if dense:
        kernel = _mlp_dense_kernel
        flops = 2 * batch * (input_dim * hidden + hidden * hidden
                             + hidden * out_p)
    else:
        kernel = _mlp_lowrank_kernel
        flops = 2 * batch * rank * (input_dim + 4 * hidden + out_p)

    in_specs = [x_spec] + [wspec(t.shape) for t in tensors]
    operands = (x_c,) + tuple(tensors)

    grid_spec = pl.GridSpec(
        grid=(n_steps,),
        in_specs=in_specs,
        out_specs=pl.BlockSpec((tm, out_p), lambda i: (i, 0)),
    )

    bytes_accessed = (x_c.size * cbytes
                      + sum(int(t.size) * t.dtype.itemsize for t in tensors)
                      + batch * out_p * 4)

    out_full = pl.pallas_call(
        kernel,
        out_shape=jax.ShapeDtypeStruct((batch, out_p), jnp.float32),
        grid_spec=grid_spec,
        compiler_params=pltpu.CompilerParams(
            dimension_semantics=("parallel",),   # megacore when n_steps > 1
            vmem_limit_bytes=vmem_limit),
        cost_estimate=pl.CostEstimate(
            flops=flops, transcendentals=0, bytes_accessed=int(bytes_accessed)),
    )(*operands)

    if keep_padded or out_p == prepared["output_dim"]:
        return out_full
    return out_full[:, :prepared["output_dim"]]


# ----------------------------------------------------------------------------
# Parameter init + pure-JAX reference
# ----------------------------------------------------------------------------
def init_params(key, input_dim, hidden_dim, output_dim, rank=4):
    ks = jax.random.split(key, 6)

    def lin(ka, kb, d_in, d_out):
        a = jax.random.normal(ka, (d_in, rank), jnp.float32) * (1.0 / jnp.sqrt(d_in))
        b = jax.random.normal(kb, (rank, d_out), jnp.float32) * (1.0 / jnp.sqrt(rank))
        c = jnp.zeros((1, d_out), jnp.float32)
        return a, b, c

    a1, b1, c1 = lin(ks[0], ks[1], input_dim, hidden_dim)
    a2, b2, c2 = lin(ks[2], ks[3], hidden_dim, hidden_dim)
    a3, b3, c3 = lin(ks[4], ks[5], hidden_dim, output_dim)
    return dict(a1=a1, b1=b1, c1=c1, a2=a2, b2=b2, c2=c2, a3=a3, b3=b3, c3=c3)


def reference_forward(x, p):
    relu = lambda v: jnp.maximum(v, 0.0)
    h = relu(x @ p["a1"] @ p["b1"] + p["c1"])
    h = relu(h @ p["a2"] @ p["b2"] + p["c2"])
    return h @ p["a3"] @ p["b3"] + p["c3"]


if __name__ == "__main__":
    key = jax.random.PRNGKey(0)
    kx, kp = jax.random.split(key)

    batch, input_dim, hidden_dim, output_dim, rank = 64, 32, 32, 16, 4
    x = jax.random.normal(kx, (batch, input_dim), jnp.float32)
    params = init_params(kp, input_dim, hidden_dim, output_dim, rank=rank)
    ref = reference_forward(x, params)

    # 1) Default path: f32, dense pre-composed weights, single grid step.
    prepared = prepare_params(params)
    out = jax.block_until_ready(ndlinear_mlp_forward(x, prepared))
    assert out.shape == (batch, output_dim)
    assert jnp.allclose(out, ref, atol=1e-4, rtol=1e-4), "dense f32 mismatch"

    # 2) Factorized path (selected automatically when layer dims > 512).
    prepared_lr = prepare_params(params, dense_max_dim=0)
    out_lr = jax.block_until_ready(ndlinear_mlp_forward(x, prepared_lr))
    assert jnp.allclose(out_lr, ref, atol=1e-4, rtol=1e-4), "low-rank f32 mismatch"

    # 3) bf16 compute path (MXU-native); looser tolerance by construction.
    prepared_bf = prepare_params(params, compute_dtype=jnp.bfloat16)
    out_bf = jax.block_until_ready(ndlinear_mlp_forward(x, prepared_bf))
    assert jnp.allclose(out_bf, ref, atol=7e-2, rtol=7e-2), "bf16 mismatch"

    print("KERNEL_OK")
</pallas_src>

<mosaic_0001>
module attributes {stable_mosaic.version = 11 : i64} {
  func.func @_mlp_dense_kernel(%arg0: i32, %arg1: memref<64x32xf32, #tpu.memory_space<vmem>>, %arg2: memref<32x32xf32, #tpu.memory_space<vmem>>, %arg3: memref<1x32xf32, #tpu.memory_space<vmem>>, %arg4: memref<32x32xf32, #tpu.memory_space<vmem>>, %arg5: memref<1x32xf32, #tpu.memory_space<vmem>>, %arg6: memref<32x128xf32, #tpu.memory_space<vmem>>, %arg7: memref<1x128xf32, #tpu.memory_space<vmem>>, %arg8: memref<64x128xf32, #tpu.memory_space<vmem>>) attributes {dimension_semantics = [#tpu.dimension_semantics<parallel>], iteration_bounds = array<i64: 1>, scalar_prefetch = 0 : i64, scratch_operands = 0 : i64, tpu.core_type = #tpu.core_type<tc>, window_params = [{transform_indices = @transform_0, window_bounds = array<i64: 64, 32>}, {pipeline_mode = #tpu.pipeline_mode<synchronous>, transform_indices = @transform_1, window_bounds = array<i64: 32, 32>}, {pipeline_mode = #tpu.pipeline_mode<synchronous>, transform_indices = @transform_2, window_bounds = array<i64: 1, 32>}, {pipeline_mode = #tpu.pipeline_mode<synchronous>, transform_indices = @transform_3, window_bounds = array<i64: 32, 32>}, {pipeline_mode = #tpu.pipeline_mode<synchronous>, transform_indices = @transform_4, window_bounds = array<i64: 1, 32>}, {pipeline_mode = #tpu.pipeline_mode<synchronous>, transform_indices = @transform_5, window_bounds = array<i64: 32, 128>}, {pipeline_mode = #tpu.pipeline_mode<synchronous>, transform_indices = @transform_6, window_bounds = array<i64: 1, 128>}, {transform_indices = @transform_7, window_bounds = array<i64: 64, 128>}]} {
    %c0 = arith.constant 0 : index
    %c0_0 = arith.constant 0 : index
    %0 = vector.load %arg1[%c0, %c0_0] : memref<64x32xf32, #tpu.memory_space<vmem>>, vector<64x32xf32>
    %c0_1 = arith.constant 0 : index
    %c0_2 = arith.constant 0 : index
    %1 = vector.load %arg2[%c0_1, %c0_2] : memref<32x32xf32, #tpu.memory_space<vmem>>, vector<32x32xf32>
    %cst = arith.constant dense<0.000000e+00> : vector<64x32xf32>
    %2 = tpu.matmul %0, %1, %cst {dimension_numbers = #tpu.dot_dimension_numbers<[1], [0], [0], [1], [0, 0, 1, 1], [], []>} : vector<64x32xf32>, vector<32x32xf32>, vector<64x32xf32> -> vector<64x32xf32>
    %c0_3 = arith.constant 0 : index
    %c0_4 = arith.constant 0 : index
    %3 = vector.load %arg3[%c0_3, %c0_4] : memref<1x32xf32, #tpu.memory_space<vmem>>, vector<1x32xf32>
    %4 = vector.broadcast %3 : vector<1x32xf32> to vector<64x32xf32>
    %5 = arith.addf %2, %4 : vector<64x32xf32>
    %cst_5 = arith.constant 0.000000e+00 : f32
    %6 = vector.broadcast %cst_5 : f32 to vector<64x32xf32>
    %7 = arith.maximumf %5, %6 : vector<64x32xf32>
    %c0_6 = arith.constant 0 : index
    %c0_7 = arith.constant 0 : index
    %8 = vector.load %arg4[%c0_6, %c0_7] : memref<32x32xf32, #tpu.memory_space<vmem>>, vector<32x32xf32>
    %cst_8 = arith.constant dense<0.000000e+00> : vector<64x32xf32>
    %9 = tpu.matmul %7, %8, %cst_8 {dimension_numbers = #tpu.dot_dimension_numbers<[1], [0], [0], [1], [0, 0, 1, 1], [], []>} : vector<64x32xf32>, vector<32x32xf32>, vector<64x32xf32> -> vector<64x32xf32>
    %c0_9 = arith.constant 0 : index
    %c0_10 = arith.constant 0 : index
    %10 = vector.load %arg5[%c0_9, %c0_10] : memref<1x32xf32, #tpu.memory_space<vmem>>, vector<1x32xf32>
    %11 = vector.broadcast %10 : vector<1x32xf32> to vector<64x32xf32>
    %12 = arith.addf %9, %11 : vector<64x32xf32>
    %cst_11 = arith.constant 0.000000e+00 : f32
    %13 = vector.broadcast %cst_11 : f32 to vector<64x32xf32>
    %14 = arith.maximumf %12, %13 : vector<64x32xf32>
    %c0_12 = arith.constant 0 : index
    %c0_13 = arith.constant 0 : index
    %15 = vector.load %arg6[%c0_12, %c0_13] : memref<32x128xf32, #tpu.memory_space<vmem>>, vector<32x128xf32>
    %cst_14 = arith.constant dense<0.000000e+00> : vector<64x128xf32>
    %16 = tpu.matmul %14, %15, %cst_14 {dimension_numbers = #tpu.dot_dimension_numbers<[1], [0], [0], [1], [0, 0, 1, 1], [], []>} : vector<64x32xf32>, vector<32x128xf32>, vector<64x128xf32> -> vector<64x128xf32>
    %c0_15 = arith.constant 0 : index
    %c0_16 = arith.constant 0 : index
    %17 = vector.load %arg7[%c0_15, %c0_16] : memref<1x128xf32, #tpu.memory_space<vmem>>, vector<1x128xf32>
    %18 = vector.broadcast %17 : vector<1x128xf32> to vector<64x128xf32>
    %19 = arith.addf %16, %18 : vector<64x128xf32>
    %c0_17 = arith.constant 0 : index
    %c0_18 = arith.constant 0 : index
    %20 = vector.load %arg8[%c0_17, %c0_18] : memref<64x128xf32, #tpu.memory_space<vmem>>, vector<64x128xf32>
    tpu.vector_store %arg8[%c0_17, %c0_18], %19 {strides = array<i32>} : memref<64x128xf32, #tpu.memory_space<vmem>>, vector<64x128xf32>,
    return
  }
  func.func @transform_0(%arg0: i32) -> (i32, i32) {
    %c0_i32 = arith.constant 0 : i32
    %c0_i32_0 = arith.constant 0 : i32
    return %arg0, %c0_i32 : i32, i32
  }
  func.func @transform_1(%arg0: i32) -> (i32, i32) {
    %c0_i32 = arith.constant 0 : i32
    %c0_i32_0 = arith.constant 0 : i32
    %c0_i32_1 = arith.constant 0 : i32
    return %c0_i32, %c0_i32_0 : i32, i32
  }
  func.func @transform_2(%arg0: i32) -> (i32, i32) {
    %c0_i32 = arith.constant 0 : i32
    %c0_i32_0 = arith.constant 0 : i32
    %c0_i32_1 = arith.constant 0 : i32
    return %c0_i32, %c0_i32_0 : i32, i32
  }
  func.func @transform_3(%arg0: i32) -> (i32, i32) {
    %c0_i32 = arith.constant 0 : i32
    %c0_i32_0 = arith.constant 0 : i32
    %c0_i32_1 = arith.constant 0 : i32
    return %c0_i32, %c0_i32_0 : i32, i32
  }
  func.func @transform_4(%arg0: i32) -> (i32, i32) {
    %c0_i32 = arith.constant 0 : i32
    %c0_i32_0 = arith.constant 0 : i32
    %c0_i32_1 = arith.constant 0 : i32
    return %c0_i32, %c0_i32_0 : i32, i32
  }
  func.func @transform_5(%arg0: i32) -> (i32, i32) {
    %c0_i32 = arith.constant 0 : i32
    %c0_i32_0 = arith.constant 0 : i32
    %c0_i32_1 = arith.constant 0 : i32
    return %c0_i32, %c0_i32_0 : i32, i32
  }
  func.func @transform_6(%arg0: i32) -> (i32, i32) {
    %c0_i32 = arith.constant 0 : i32
    %c0_i32_0 = arith.constant 0 : i32
    %c0_i32_1 = arith.constant 0 : i32
    return %c0_i32, %c0_i32_0 : i32, i32
  }
  func.func @transform_7(%arg0: i32) -> (i32, i32) {
    %c0_i32 = arith.constant 0 : i32
    %c0_i32_0 = arith.constant 0 : i32
    return %arg0, %c0_i32 : i32, i32
  }
}

</mosaic_0001>

<bundles_post_ra>
// kernel: tpu_custom_call.1
= control target key start
LH: loop header
LB: loop body
LE: loop exit
PB: predicated region body
PF: predicated region fallthrough
CT: control target
= control target key end

     0   :  { %vm46_vm0 = vcmask 261120   ;;  %s822_s0 = inlined_call_operand.vmem [shape: f32[64,32], index: 0, kind: input, shape index: {}]   ;;  %s823_s1 = inlined_call_operand.vmem [shape: f32[32,32], index: 1, kind: input, shape index: {}]   ;;  %s824_s2 = inlined_call_operand.vmem [shape: f32[1,32], index: 2, kind: input, shape index: {}]   ;;  %s825_s3 = inlined_call_operand.vmem [shape: f32[32,32], index: 3, kind: input, shape index: {}]   ;;  %s826_s4 = inlined_call_operand.vmem [shape: f32[1,32], index: 4, kind: input, shape index: {}]   ;;  %s827_s5 = inlined_call_operand.vmem [shape: f32[32,128], index: 5, kind: input, shape index: {}]   ;;  %s828_s6 = inlined_call_operand.vmem [shape: f32[1,128], index: 6, kind: input, shape index: {}]   ;;  %s829_s7 = inlined_call_operand.hbm [shape: f32[64,128], index: 7, kind: output, shape index: {}]  }
   0x1   :  { %v35_v0 = vld [vmem:[%s823_s1] sm:$0xff]  ;;  %v36_v1 = vld [vmem:[%s823_s1 + $0x8] sm:$0xff]  ;;  %v37_v2 = vld [vmem:[%s823_s1 + $0x10] sm:$0xff] }
   0x2   :  { %v619_v3 = vpack.c.bf16 %v36_v1, %v35_v0  ;;  %v38_v4 = vld [vmem:[%s823_s1 + $0x18] sm:$0xff]  ;;  %v27_v5 = vld [vmem:[%s822_s0] sm:$0xff]  ;;  %v185_v9 = vld [vmem:[%s825_s3 + $0x8] sm:$0xff] }
   0x3   :  { %v623_v6 = vpack.c.bf16 %v38_v4, %v37_v2  ;;  %567 = vmatprep.mubr.msk.f32.mxu0 %vm46_vm0, %v27_v5  ;;  %v31_v7 = vld [vmem:[%s822_s0 + $0x20] sm:$0xff] }
   0x4   :  { %620 = vmatprep.subr.bf16.mxu0 %v619_v3  ;;  %643 = vmatprep.subr.bf16.mxu1 %v619_v3  ;;  %v184_v8 = vld [vmem:[%s825_s3] sm:$0xff] }
   0x5   :  { %622 = vmatpush3.bf16.msra.mxu0 %v619_v3  ;;  %645 = vmatpush3.bf16.msra.mxu1 %v619_v3 }
   0x6   :  { %12 = vsyncpa [#allocation3], 0  ;;  %624 = vmatprep.subr.bf16.mxu0 %v623_v6  ;;  %644 = vmatprep.subr.bf16.mxu1 %v623_v6  ;;  %v627_v10 = vpack.c.bf16 %v185_v9, %v184_v8  ;;  %v28_v11 = vld [vmem:[%s822_s0 + $0x8] sm:$0xff]  ;;  %v29_v13 = vld [vmem:[%s822_s0 + $0x10] sm:$0xff]  ;;  %s674_s17 = smov [#allocation2]  }
   0x7   :  { %573 = vmatprep.mubr.msk.f32.mxu1 %vm46_vm0, %v31_v7  ;;  %v32_v12 = vld [vmem:[%s822_s0 + $0x28] sm:$0xff]  ;;  %v33_v14 = vld [vmem:[%s822_s0 + $0x30] sm:$0xff]  ;;  %v30_v15 = vld [vmem:[%s822_s0 + $0x18] sm:$0xff]  ;;  %s485_s18 = sshll.u32 %s674_s17, 4  ;;  %s486_s18 = int_to_ptr.vmem [resolvable:$true] %s485_s18 }
   0x8   :  { %v34_v16 = vld [vmem:[%s822_s0 + $0x38] sm:$0xff]  ;;  %v186_v17 = vld [vmem:[%s825_s3 + $0x10] sm:$0xff]  ;;  %v332_v20 = vld [vmem:[%s827_s5] sm:$0xff]  ;;  %p655_p1 = scmp.lt.s32.totalorder %s486_s18, %s486_s18 }
   0x9   :  { %626 = vmatpush3.bf16.msra.mxu0 %v623_v6  ;;  %646 = vmatpush3.bf16.msra.mxu1 %v623_v6  ;;  %v187_v18 = vld [vmem:[%s825_s3 + $0x18] sm:$0xff]  ;;  %v333_v21 = vld [vmem:[%s827_s5 + $0x8] sm:$0xff]  ;;  %v496_v23 = vld [vmem:[%s824_s2] ss:$0 sm:$0xff] }
   0xa   :  { %628 = vmatprep.subr.bf16.mxu1 %v627_v10  ;;  %v631_v19 = vpack.c.bf16 %v187_v18, %v186_v17  ;;  %v635_v22 = vpack.c.bf16 %v333_v21, %v332_v20  ;;  %v334_v48 = vld [vmem:[%s827_s5 + $0x10] sm:$0xff]  ;;  %v335_v49 = vld [vmem:[%s827_s5 + $0x18] sm:$0xff]  ;;  %v505_v51 = vld [vmem:[%s826_s4] ss:$0 sm:$0xff] }
   0xb   :  { %v639_v50 = vpack.c.bf16 %v335_v49, %v334_v48 }
   0xc   :  { %568 = vmatmul.mubr.msk.f32.vlgmr.msra.gmra.mrb[0].mxu0 %vm46_vm0, %v28_v11  ;;  %574 = vmatmul.mubr.msk.f32.vlgmr.msra.gmra.mrb[0].mxu1 %vm46_vm0, %v32_v12  ;;  %v514_v12 = vld [vmem:[%s828_s6] ss:$0 sm:$0xff]  ;;  %s650_s6 = scalar_lea.vmem %s486_s18, 1024 }
   0xd   :  { %570 = vmatprep.mubr.msk.f32.mxu0 %vm46_vm0, %v29_v13  ;;  %576 = vmatprep.mubr.msk.f32.mxu1 %vm46_vm0, %v33_v14  ;;  %p651_p0 = scmp.ne.s32.totalorder %s486_s18, %s650_s6  ;;  %p656_p2 = scmp.lt.s32.totalorder %s650_s6, %s650_s6 }
   0xe   :  { %630 = vmatpush3.bf16.msra.mxu1 %v627_v10  ;;  %636 = vmatprep.subr.bf16.mxu0 %v635_v22 }
   0xf   :  { %632 = vmatprep.subr.bf16.mxu1 %v631_v19  ;;  %638 = vmatpush3.bf16.msra.mxu0 %v635_v22  ;;  %p657_p3 = por %p656_p2, %p655_p1 }
  0x10   :  { %571 = vmatmul.mubr.msk.f32.gmra.mrb[2].mxu0 %vm46_vm0, %v30_v15  ;;  %577 = vmatmul.mubr.msk.f32.gmra.mrb[2].mxu1 %vm46_vm0, %v34_v16 }
  0x11   :  { %640 = vmatprep.subr.bf16.mxu0 %v639_v50  ;;  %p658_p4 = pnand %p657_p3, %p651_p0 }
  0x12   :  { %634 = vmatpush3.bf16.msra.mxu1 %v631_v19 }
  0x13   :  { %642 = vmatpush3.bf16.msra.mxu0 %v639_v50 }
  0xdf   :  { %v569_v24 = vpop.f32.mrb[0].mxu0  ;;  %v575_v25 = vpop.f32.mrb[0].mxu1 }
  0xe0   :  { %v143_v26 = vadd.f32 %v569_v24, %v496_v23  ;;  %v137_v27 = vpop.f32.mrb[1].mxu0  ;;  %v157_v28 = vpop.f32.mrb[1].mxu1  ;;  %v163_v43 = vadd.f32 %v575_v25, %v496_v23 }
  0xe1   :  { %v138_v29 = vadd.f32 %v496_v23, %v137_v27  ;;  %v158_v32 = vadd.f32 %v496_v23, %v157_v28 }
  0xe2   :  { %v177_v34 = vmax.f32 %v143_v26, 0.0  ;;  %v181_v45 = vmax.f32 %v163_v43, 0.0 }
  0xe3   :  { %v176_v30 = vmax.f32 %v138_v29, 0.0  ;;  %v572_v31 = vpop.f32.mrb[2].mxu0  ;;  %v578_v33 = vpop.f32.mrb[2].mxu1  ;;  %v180_v40 = vmax.f32 %v158_v32, 0.0 }
  0xe4   :  { %v153_v35 = vadd.f32 %v572_v31, %v496_v23  ;;  %v147_v36 = vpop.f32.mrb[3].mxu0  ;;  %v167_v37 = vpop.f32.mrb[3].mxu1  ;;  %v173_v46 = vadd.f32 %v578_v33, %v496_v23 }
  0xe5   :  { %v148_v38 = vadd.f32 %v496_v23, %v147_v36  ;;  %587 = vmatprep.mubr.msk.f32.mxu1 %vm46_vm0, %v176_v30  ;;  %v168_v41 = vadd.f32 %v496_v23, %v167_v37 }
  0xe6   :  { %588 = vmatmul.mubr.msk.f32.vlgmr.msra.gmra.mrb[4].mxu1 %vm46_vm0, %v177_v34  ;;  %v179_v42 = vmax.f32 %v153_v35, 0.0  ;;  %v183_v47 = vmax.f32 %v173_v46, 0.0 }
  0xe7   :  { %v178_v39 = vmax.f32 %v148_v38, 0.0  ;;  %v182_v44 = vmax.f32 %v168_v41, 0.0 }
  0xe9   :  { %590 = vmatprep.mubr.msk.f32.mxu1 %vm46_vm0, %v178_v39 }
  0xea   :  { %591 = vmatmul.mubr.msk.f32.gmra.mrb[6].mxu1 %vm46_vm0, %v179_v42 }
  0xeb   :  { %593 = vmatprep.mubr.msk.f32.mxu1 %vm46_vm0, %v180_v40 }
  0xee   :  { %594 = vmatmul.mubr.msk.f32.gmra.mrb[8].mxu1 %vm46_vm0, %v181_v45 }
  0xef   :  { %596 = vmatprep.mubr.msk.f32.mxu1 %vm46_vm0, %v182_v44 }
  0xf2   :  { %597 = vmatmul.mubr.msk.f32.gmra.mrb[10].mxu1 %vm46_vm0, %v183_v47 }
 0x1b9   :  { %v589_v52 = vpop.f32.mrb[4].mxu1 }
 0x1ba   :  { %v291_v53 = vadd.f32 %v589_v52, %v505_v51  ;;  %v285_v54 = vpop.f32.mrb[5].mxu1 }
 0x1bb   :  { %v286_v55 = vadd.f32 %v505_v51, %v285_v54 }
 0x1bc   :  { %v325_v58 = vmax.f32 %v291_v53, 0.0 }
 0x1bd   :  { %v324_v56 = vmax.f32 %v286_v55, 0.0  ;;  %v592_v57 = vpop.f32.mrb[6].mxu1 }
 0x1be   :  { %v301_v59 = vadd.f32 %v592_v57, %v505_v51  ;;  %v295_v60 = vpop.f32.mrb[7].mxu1 }
 0x1bf   :  { %v296_v61 = vadd.f32 %v505_v51, %v295_v60  ;;  %607 = vmatprep.mubr.msk.f32.mxu0 %vm46_vm0, %v324_v56 }
 0x1c0   :  { %608 = vmatmul.mubr.msk.f32.vlgmr.msra.gmra.mrb[4].mxu0 %vm46_vm0, %v325_v58  ;;  %v327_v0 = vmax.f32 %v301_v59, 0.0 }
 0x1c1   :  { %v326_v62 = vmax.f32 %v296_v61, 0.0  ;;  %v595_v63 = vpop.f32.mrb[8].mxu1 }
 0x1c2   :  { %v311_v1 = vadd.f32 %v595_v63, %v505_v51  ;;  %v305_v2 = vpop.f32.mrb[9].mxu1 }
 0x1c3   :  { %v306_v3 = vadd.f32 %v505_v51, %v305_v2  ;;  %610 = vmatprep.mubr.msk.f32.mxu0 %vm46_vm0, %v326_v62 }
 0x1c4   :  { %611 = vmatmul.mubr.msk.f32.gmra.mrb[6].mxu0 %vm46_vm0, %v327_v0  ;;  %v329_v6 = vmax.f32 %v311_v1, 0.0 }
 0x1c5   :  { %v328_v4 = vmax.f32 %v306_v3, 0.0  ;;  %v598_v5 = vpop.f32.mrb[10].mxu1 }
 0x1c6   :  { %v321_v7 = vadd.f32 %v598_v5, %v505_v51  ;;  %v315_v8 = vpop.f32.mrb[11].mxu1 }
 0x1c7   :  { %v316_v9 = vadd.f32 %v505_v51, %v315_v8  ;;  %613 = vmatprep.mubr.msk.f32.mxu0 %vm46_vm0, %v328_v4 }
 0x1c8   :  { %614 = vmatmul.mubr.msk.f32.gmra.mrb[8].mxu0 %vm46_vm0, %v329_v6  ;;  %v331_v11 = vmax.f32 %v321_v7, 0.0 }
 0x1c9   :  { %v330_v10 = vmax.f32 %v316_v9, 0.0 }
 0x1cb   :  { %616 = vmatprep.mubr.msk.f32.mxu0 %vm46_vm0, %v330_v10 }
 0x1cc   :  { %617 = vmatmul.mubr.msk.f32.gmra.mrb[10].mxu0 %vm46_vm0, %v331_v11 }
 0x293   :  { %v609_v13 = vpop.f32.mrb[4].mxu0 }
 0x294   :  { %v439_v14 = vadd.f32 %v609_v13, %v514_v12  ;;  %v433_v15 = vpop.f32.mrb[5].mxu0 }
 0x295   :  { %v434_v16 = vadd.f32 %v514_v12, %v433_v15 }
 0x296   :  { %473 = vst [vmem:[#allocation2 + $0x8] sm:$0xff] %v439_v14 }
 0x297   :  { %472 = vst [vmem:[#allocation2] sm:$0xff] %v434_v16  ;;  %v612_v17 = vpop.f32.mrb[6].mxu0 }
 0x298   :  { %v449_v18 = vadd.f32 %v612_v17, %v514_v12  ;;  %v443_v19 = vpop.f32.mrb[7].mxu0 }
 0x299   :  { %v444_v20 = vadd.f32 %v514_v12, %v443_v19 }
 0x29a   :  { %475 = vst [vmem:[#allocation2 + $0x18] sm:$0xff] %v449_v18 }
 0x29b   :  { %474 = vst [vmem:[#allocation2 + $0x10] sm:$0xff] %v444_v20  ;;  %v615_v21 = vpop.f32.mrb[8].mxu0 }
 0x29c   :  { %v459_v22 = vadd.f32 %v615_v21, %v514_v12  ;;  %v453_v23 = vpop.f32.mrb[9].mxu0 }
 0x29d   :  { %v454_v24 = vadd.f32 %v514_v12, %v453_v23 }
 0x29e   :  { %477 = vst [vmem:[#allocation2 + $0x28] sm:$0xff] %v459_v22 }
 0x29f   :  { %476 = vst [vmem:[#allocation2 + $0x20] sm:$0xff] %v454_v24  ;;  %v618_v25 = vpop.f32.mrb[10].mxu0 }
 0x2a0   :  { %v469_v26 = vadd.f32 %v618_v25, %v514_v12  ;;  %v463_v27 = vpop.f32.mrb[11].mxu0 }
 0x2a1   :  { %v464_v28 = vadd.f32 %v514_v12, %v463_v27 }
 0x2a2   :  { %479 = vst [vmem:[#allocation2 + $0x38] sm:$0xff] %v469_v26 }
 0x2a3   :  { %478 = vst [vmem:[#allocation2 + $0x30] sm:$0xff] %v464_v28 }
 0x2a4   :  { %661 = shalt.err (!%p658_p4)
}
 0x2a5   :  { %s662_s21 = scalar_lea.hbm %s829_s7, 1024 }
 0x2a6   :  { %p663_p5 = scmp.ne.s32.totalorder %s829_s7, %s662_s21  ;;  %p666_p6 = scmp.lt.u32.totalorder %s662_s21, %s829_s7 }
 0x2a8   :  { %p668_p7 = pnand %p666_p6, %p663_p5 }
 0x2aa   :  { %671 = shalt.err (!%p668_p7)
}
 0x2ab   :  { %s675_s26 = smov 128   ;;  %s676_s27 = smov 8  }
 0x2ac   :  { %491 = dma.vmem_to_hbm [thread:$0]  %s486_s18, 1024, %s829_s7, [#allocation3], %s675_s26, %s675_s26, %s676_s27  }
 0x2ad   :  { %672 = dma.done.wait [#allocation3], 1024  }
 0x2ae   :  { %673 = vsyncadd [#allocation3], 4294966272 }
 0x2af   :  { %495 = vsyncpa [#allocation3], 1 }

</bundles_post_ra>
